<compile_context>
chip_gen: v5e
topology: v5e:2x2
jax: 0.10.0
libtpu: 0.0.40
codegen_flags: <defaults>
</compile_context>

<pallas_src>
import math

import jax
import jax.numpy as jnp
from jax import lax
from jax.experimental import pallas as pl
from jax.experimental.pallas import tpu as pltpu

EPSILON = 0.05                      # sinkhorn epsilon
TEMP = 0.07                         # concrete_bern temperature
_DN = (((1,), (1,)), ((), ()))      # contract last dims: A @ B.T without an in-kernel transpose
_VMEM_LIMIT = 32 * 1024 * 1024      # scoped-VMEM budget (<= 48 MiB, safe on v5e/v6e/v7x)


def _l2n(a):
    # F.normalize(dim=1, p=2): a / max(||a||, 1e-12), using EUP rsqrt instead of sqrt+div.
    ss = jnp.sum(a * a, axis=-1, keepdims=True)
    return a * lax.rsqrt(jnp.maximum(ss, 1e-24))


def _pick_b_blk(bs, n_vars, seq_len, d_model, n_cluster,
                target_rows=512, vmem_budget_bytes=8 << 20):
    """Batch elements per grid step: aim for >= target_rows flattened MXU rows (covers the
    v5e 4x128 layout as well), stay well inside scoped VMEM, keep bs % b_blk == 0, and
    prefer b_blk that keeps output blocks tile-aligned (b_blk % 8 == 0 or b_blk == bs)."""
    per_b = 4 * (n_vars * (seq_len + 2 * d_model) + n_cluster * d_model)
    cap_vmem = max(1, vmem_budget_bytes // (3 * per_b))
    cap_rows = max(1, -(-target_rows // n_vars))            # ceil(target_rows / n_vars)
    cap = min(bs, cap_rows, cap_vmem)
    divs = [d for d in range(1, cap + 1) if bs % d == 0]
    good = [d for d in divs if d % 8 == 0 or d == bs]
    return max(good) if good else max(divs)


def _make_assign_kernel(bs, b_blk, n_vars, d_model):
    inv_bs = 1.0 / float(bs)

    def kernel(x_ref, w_ref, b_ref, ce_ref, noiset_ref,
               prob_ref, maskt_ref, sxn_ref):
        i = pl.program_id(0)

        # Flattened Linear(seq_len -> d_model) for the whole batch block: one MXU matmul.
        xb = x_ref[...]                                          # (b_blk, n_vars, seq_len)
        x2 = xb.reshape(b_blk * n_vars, xb.shape[-1])            # (b_blk*n_vars, seq_len)
        xe = jnp.dot(x2, w_ref[...], preferred_element_type=jnp.float32)
        xe = xe + b_ref[...].astype(jnp.float32)                 # + bias (broadcast)
        xn = _l2n(xe)                                            # row-wise l2 normalize
        part = jnp.sum(xn.reshape(b_blk, n_vars, d_model), axis=0)   # sum over this block

        @pl.when(i == 0)
        def _():
            sxn_ref[...] = jnp.zeros_like(sxn_ref)

        sxn_ref[...] += part                                     # running sum_b l2norm(x_emb_b)

        @pl.when(i == pl.num_programs(0) - 1)
        def _():
            cn = _l2n(ce_ref[...].astype(jnp.float32))           # (n_cluster, d_model)
            mean_xn = sxn_ref[...] * inv_bs                      # (n_vars, d_model)

            # prob_avg and prob_avg.T via two tiny dots (no in-kernel transpose needed).
            pa = lax.dot_general(mean_xn, cn, _DN,
                                 preferred_element_type=jnp.float32)   # (n_vars, n_cluster)
            pat = lax.dot_general(cn, mean_xn, _DN,
                                  preferred_element_type=jnp.float32)  # (n_cluster, n_vars)

            # sinkhorn (single exp + row normalization over the cluster axis).
            # Exact divide: this runs exactly once and prob_avg is a returned output.
            q = jnp.exp(pa * (1.0 / EPSILON))
            q = q / jnp.sum(q, axis=1, keepdims=True)
            prob_ref[...] = q.astype(prob_ref.dtype)

            qt = jnp.exp(pat * (1.0 / EPSILON))                  # same values, transposed layout
            qt = qt / jnp.sum(qt, axis=0, keepdims=True)

            # concrete_bern(prob_avg).T with pre-sampled (pre-transposed) uniform noise.
            noise = noiset_ref[...].astype(jnp.float32)          # (n_cluster, n_vars)
            rn = jnp.log(noise) - jnp.log(1.0 - noise)
            lg = jnp.log(qt + 1e-10) - jnp.log(1.0 - qt + 1e-10)
            maskt_ref[...] = jax.nn.sigmoid((lg + rn) * (1.0 / TEMP)).astype(maskt_ref.dtype)

    return kernel


def _make_attn_kernel(b_blk, n_vars, n_cluster, d_model):
    scale = 1.0 / math.sqrt(d_model)     # n_heads = 1 -> E = d_model

    def kernel(x_ref, w_ref, b_ref, ce_ref, maskt_ref, out_ref):
        # Recompute x_emb for this batch block (kills the x_emb HBM round trip; the
        # flattened matmul hides under the pipelined step).
        xb = x_ref[...]                                          # (b_blk, n_vars, seq_len)
        x2 = xb.reshape(b_blk * n_vars, xb.shape[-1])
        kb = (jnp.dot(x2, w_ref[...], preferred_element_type=jnp.float32)
              + b_ref[...].astype(jnp.float32))
        kb = kb.reshape(b_blk, n_vars, d_model)                  # keys = values = x_emb

        ce = ce_ref[...].astype(jnp.float32)                     # queries = cluster_emb
        qb = jnp.broadcast_to(ce[None], (b_blk, n_cluster, d_model))

        s = jnp.einsum('bcd,bvd->bcv', qb, kb,
                       preferred_element_type=jnp.float32) * scale       # (b, n_cluster, n_vars)
        m = jnp.max(s, axis=-1, keepdims=True)
        e = jnp.exp(s - m)
        a = e * pl.reciprocal(jnp.sum(e, axis=-1, keepdims=True), approx=True)   # softmax
        a = a * maskt_ref[...].astype(jnp.float32)[None]         # A * mask.T (eval: no dropout)

        res = jnp.einsum('bcv,bvd->bcd', a, kb,
                         preferred_element_type=jnp.float32)     # (b, n_cluster, d_model)

        # Lane-dense writeback: fill the (b_blk, n_cluster*d_model) output slab with
        # static d_model-wide slices (out slab last dim is a multiple of 128 here).
        for c in range(n_cluster):
            out_ref[:, c * d_model:(c + 1) * d_model] = res[:, c, :].astype(out_ref.dtype)

    return kernel


def cluster_assigner_forward(x, w, bias, cluster_emb, noise):
    """x: (bs, seq_len, n_vars); w: (seq_len, d_model); bias: (d_model,);
    cluster_emb: (n_cluster, d_model); noise: (n_vars, n_cluster) uniform(1e-10, 1-1e-10).
    Returns (prob_avg (n_vars, n_cluster), cluster_emb_out (bs, n_cluster, d_model))."""
    bs, seq_len, n_vars = x.shape
    n_cluster, d_model = cluster_emb.shape
    b_blk = _pick_b_blk(bs, n_vars, seq_len, d_model, n_cluster)
    nb = bs // b_blk

    # glue (plain JAX): x.permute(0, 2, 1) once, reused by BOTH calls; tiny noise transpose
    # replaces the previous inter-call mask transpose.
    x_p = jnp.transpose(x, (0, 2, 1))                  # (bs, n_vars, seq_len)
    bias2d = bias.reshape(1, d_model)
    noise_t = jnp.transpose(noise)                     # (n_cluster, n_vars)

    cost1 = pl.CostEstimate(
        flops=int(2 * bs * n_vars * seq_len * d_model
                  + 4 * n_vars * d_model * n_cluster + 6 * bs * n_vars * d_model),
        transcendentals=int(bs * n_vars + 8 * n_vars * n_cluster),
        bytes_accessed=int(4 * (bs * n_vars * seq_len + seq_len * d_model + d_model
                                + n_cluster * d_model + 3 * n_vars * n_cluster)))

    # ---- call 1: flattened Linear + l2norm + batch-mean + sinkhorn + concrete_bern ----
    prob_avg, mask_t = pl.pallas_call(
        _make_assign_kernel(bs, b_blk, n_vars, d_model),
        grid_spec=pltpu.PrefetchScalarGridSpec(
            num_scalar_prefetch=0,
            grid=(nb,),
            in_specs=[
                pl.BlockSpec((b_blk, n_vars, seq_len), lambda i: (i, 0, 0)),
                pl.BlockSpec((seq_len, d_model), lambda i: (0, 0)),
                pl.BlockSpec((1, d_model), lambda i: (0, 0)),
                pl.BlockSpec((n_cluster, d_model), lambda i: (0, 0)),
                pl.BlockSpec((n_cluster, n_vars), lambda i: (0, 0)),
            ],
            out_specs=[
                pl.BlockSpec((n_vars, n_cluster), lambda i: (0, 0)),
                pl.BlockSpec((n_cluster, n_vars), lambda i: (0, 0)),
            ],
            scratch_shapes=[pltpu.VMEM((n_vars, d_model), jnp.float32)],
        ),
        out_shape=(
            jax.ShapeDtypeStruct((n_vars, n_cluster), jnp.float32),
            jax.ShapeDtypeStruct((n_cluster, n_vars), jnp.float32),
        ),
        compiler_params=pltpu.CompilerParams(
            dimension_semantics=("arbitrary",),        # batch-mean reduction over blocks
            vmem_limit_bytes=_VMEM_LIMIT),
        cost_estimate=cost1,
    )(x_p, w, bias2d, cluster_emb, noise_t)

    cost2 = pl.CostEstimate(
        flops=int(2 * bs * n_vars * seq_len * d_model
                  + 4 * bs * n_cluster * n_vars * d_model),
        transcendentals=int(bs * n_cluster * n_vars),
        bytes_accessed=int(4 * (bs * n_vars * seq_len + seq_len * d_model + d_model
                                + n_cluster * d_model + n_cluster * n_vars
                                + bs * n_cluster * d_model)))

    # ---- call 2: CrossAttention p2c (n_heads=1), batched over b_blk, parallel grid ----
    out_flat = pl.pallas_call(
        _make_attn_kernel(b_blk, n_vars, n_cluster, d_model),
        grid_spec=pltpu.PrefetchScalarGridSpec(
            num_scalar_prefetch=0,
            grid=(nb,),
            in_specs=[
                pl.BlockSpec((b_blk, n_vars, seq_len), lambda i: (i, 0, 0)),
                pl.BlockSpec((seq_len, d_model), lambda i: (0, 0)),
                pl.BlockSpec((1, d_model), lambda i: (0, 0)),
                pl.BlockSpec((n_cluster, d_model), lambda i: (0, 0)),
                pl.BlockSpec((n_cluster, n_vars), lambda i: (0, 0)),
            ],
            out_specs=pl.BlockSpec((b_blk, n_cluster * d_model), lambda i: (i, 0)),
        ),
        out_shape=jax.ShapeDtypeStruct((bs, n_cluster * d_model), jnp.float32),
        compiler_params=pltpu.CompilerParams(
            dimension_semantics=("parallel",),         # megacore sharding / pipelined writeback
            vmem_limit_bytes=_VMEM_LIMIT),
        cost_estimate=cost2,
    )(x_p, w, bias2d, cluster_emb, mask_t)

    out_emb = out_flat.reshape(bs, n_cluster, d_model)
    return prob_avg, out_emb


if __name__ == "__main__":
    # Small shapes consistent with the module's forward.
    bs, seq_len, n_vars, d_model, n_cluster = 2, 16, 8, 32, 4

    key = jax.random.PRNGKey(0)
    kx, kw, kb, kc, kn = jax.random.split(key, 5)

    x = jax.random.normal(kx, (bs, seq_len, n_vars), jnp.float32)

    # nn.Linear(seq_len, d_model) params (deterministic kaiming-uniform-style init).
    bound = 1.0 / math.sqrt(seq_len)
    w = jax.random.uniform(kw, (seq_len, d_model), jnp.float32, -bound, bound)
    bias = jax.random.uniform(kb, (d_model,), jnp.float32, -bound, bound)

    # cluster_emb: kaiming_uniform_(a=sqrt(5)) over (n_cluster, d_model) -> bound 1/sqrt(d_model).
    cbound = 1.0 / math.sqrt(d_model)
    cluster_emb = jax.random.uniform(kc, (n_cluster, d_model), jnp.float32, -cbound, cbound)

    # Pre-sampled uniform noise for concrete_bern (same shape as prob_avg, like torch).
    noise = jax.random.uniform(kn, (n_vars, n_cluster), jnp.float32, 1e-10, 1.0 - 1e-10)

    prob_avg, cl_emb = cluster_assigner_forward(x, w, bias, cluster_emb, noise)
    jax.block_until_ready((prob_avg, cl_emb))

    assert prob_avg.shape == (n_vars, n_cluster)
    assert cl_emb.shape == (bs, n_cluster, d_model)
    print("KERNEL_OK")
</pallas_src>

<mosaic_0001>
module attributes {stable_mosaic.version = 11 : i64} {
  func.func @kernel(%arg0: i32, %arg1: memref<2x8x16xf32, #tpu.memory_space<vmem>>, %arg2: memref<16x32xf32, #tpu.memory_space<vmem>>, %arg3: memref<1x32xf32, #tpu.memory_space<vmem>>, %arg4: memref<4x32xf32, #tpu.memory_space<vmem>>, %arg5: memref<4x8xf32, #tpu.memory_space<vmem>>, %arg6: memref<8x4xf32, #tpu.memory_space<vmem>>, %arg7: memref<4x8xf32, #tpu.memory_space<vmem>>, %arg8: memref<8x32xf32, #tpu.memory_space<vmem>>) attributes {dimension_semantics = [#tpu.dimension_semantics<arbitrary>], iteration_bounds = array<i64: 1>, scalar_prefetch = 0 : i64, scratch_operands = 1 : i64, tpu.core_type = #tpu.core_type<tc>, window_params = [{transform_indices = @transform_0, window_bounds = array<i64: 2, 8, 16>}, {pipeline_mode = #tpu.pipeline_mode<synchronous>, transform_indices = @transform_1, window_bounds = array<i64: 16, 32>}, {pipeline_mode = #tpu.pipeline_mode<synchronous>, transform_indices = @transform_2, window_bounds = array<i64: 1, 32>}, {pipeline_mode = #tpu.pipeline_mode<synchronous>, transform_indices = @transform_3, window_bounds = array<i64: 4, 32>}, {pipeline_mode = #tpu.pipeline_mode<synchronous>, transform_indices = @transform_4, window_bounds = array<i64: 4, 8>}, {pipeline_mode = #tpu.pipeline_mode<synchronous>, transform_indices = @transform_5, window_bounds = array<i64: 8, 4>}, {pipeline_mode = #tpu.pipeline_mode<synchronous>, transform_indices = @transform_6, window_bounds = array<i64: 4, 8>}]} {
    %c0 = arith.constant 0 : index
    %c0_0 = arith.constant 0 : index
    %c0_1 = arith.constant 0 : index
    %0 = vector.load %arg1[%c0, %c0_0, %c0_1] : memref<2x8x16xf32, #tpu.memory_space<vmem>>, vector<2x8x16xf32>
    %1 = vector.shape_cast %0 : vector<2x8x16xf32> to vector<16x16xf32>
    %c0_2 = arith.constant 0 : index
    %c0_3 = arith.constant 0 : index
    %2 = vector.load %arg2[%c0_2, %c0_3] : memref<16x32xf32, #tpu.memory_space<vmem>>, vector<16x32xf32>
    %cst = arith.constant dense<0.000000e+00> : vector<16x32xf32>
    %3 = tpu.matmul %1, %2, %cst {dimension_numbers = #tpu.dot_dimension_numbers<[1], [0], [0], [1], [0, 0, 1, 1], [], []>} : vector<16x16xf32>, vector<16x32xf32>, vector<16x32xf32> -> vector<16x32xf32>
    %c0_4 = arith.constant 0 : index
    %c0_5 = arith.constant 0 : index
    %4 = vector.load %arg3[%c0_4, %c0_5] : memref<1x32xf32, #tpu.memory_space<vmem>>, vector<1x32xf32>
    %5 = vector.broadcast %4 : vector<1x32xf32> to vector<16x32xf32>
    %6 = arith.addf %3, %5 : vector<16x32xf32>
    %7 = arith.mulf %6, %6 : vector<16x32xf32>
    %cst_6 = arith.constant dense<0.000000e+00> : vector<16xf32>
    %8 = vector.multi_reduction <add>, %7, %cst_6 [1] : vector<16x32xf32> to vector<16xf32>
    %9 = vector.shape_cast %8 : vector<16xf32> to vector<16x1xf32>
    %cst_7 = arith.constant 1.000000e-24 : f32
    %10 = vector.broadcast %cst_7 : f32 to vector<16x1xf32>
    %11 = arith.maximumf %9, %10 : vector<16x1xf32>
    %12 = math.rsqrt %11 : vector<16x1xf32>
    %13 = vector.broadcast %12 : vector<16x1xf32> to vector<16x32xf32>
    %14 = arith.mulf %6, %13 : vector<16x32xf32>
    %15 = vector.shape_cast %14 : vector<16x32xf32> to vector<2x8x32xf32>
    %cst_8 = arith.constant dense<0.000000e+00> : vector<8x32xf32>
    %16 = vector.multi_reduction <add>, %15, %cst_8 [0] : vector<2x8x32xf32> to vector<8x32xf32>
    %c0_i32 = arith.constant 0 : i32
    %17 = arith.cmpi eq, %arg0, %c0_i32 : i32
    %18 = arith.extui %17 : i1 to i32
    %c0_i32_9 = arith.constant 0 : i32
    %19 = arith.cmpi ne, %18, %c0_i32_9 : i32
    scf.if %19 {
      %cst_16 = arith.constant 0.000000e+00 : f32
      %26 = vector.broadcast %cst_16 : f32 to vector<8x32xf32>
      %c0_17 = arith.constant 0 : index
      %c0_18 = arith.constant 0 : index
      %27 = vector.load %arg8[%c0_17, %c0_18] : memref<8x32xf32, #tpu.memory_space<vmem>>, vector<8x32xf32>
      tpu.vector_store %arg8[%c0_17, %c0_18], %26 {strides = array<i32>} : memref<8x32xf32, #tpu.memory_space<vmem>>, vector<8x32xf32>,
    } else {
    }
    %c0_10 = arith.constant 0 : index
    %c0_11 = arith.constant 0 : index
    %20 = vector.load %arg8[%c0_10, %c0_11] : memref<8x32xf32, #tpu.memory_space<vmem>>, vector<8x32xf32>
    %21 = arith.addf %20, %16 : vector<8x32xf32>
    %c0_12 = arith.constant 0 : index
    %c0_13 = arith.constant 0 : index
    %22 = vector.load %arg8[%c0_12, %c0_13] : memref<8x32xf32, #tpu.memory_space<vmem>>, vector<8x32xf32>
    tpu.vector_store %arg8[%c0_12, %c0_13], %21 {strides = array<i32>} : memref<8x32xf32, #tpu.memory_space<vmem>>, vector<8x32xf32>,
    %c0_i32_14 = arith.constant 0 : i32
    %23 = arith.cmpi eq, %arg0, %c0_i32_14 : i32
    %24 = arith.extui %23 : i1 to i32
    %c0_i32_15 = arith.constant 0 : i32
    %25 = arith.cmpi ne, %24, %c0_i32_15 : i32
    scf.if %25 {
      %c0_16 = arith.constant 0 : index
      %c0_17 = arith.constant 0 : index
      %26 = vector.load %arg4[%c0_16, %c0_17] : memref<4x32xf32, #tpu.memory_space<vmem>>, vector<4x32xf32>
      %27 = arith.mulf %26, %26 : vector<4x32xf32>
      %cst_18 = arith.constant dense<0.000000e+00> : vector<4xf32>
      %28 = vector.multi_reduction <add>, %27, %cst_18 [1] : vector<4x32xf32> to vector<4xf32>
      %29 = vector.shape_cast %28 : vector<4xf32> to vector<4x1xf32>
      %cst_19 = arith.constant 1.000000e-24 : f32
      %30 = vector.broadcast %cst_19 : f32 to vector<4x1xf32>
      %31 = arith.maximumf %29, %30 : vector<4x1xf32>
      %32 = math.rsqrt %31 : vector<4x1xf32>
      %33 = vector.broadcast %32 : vector<4x1xf32> to vector<4x32xf32>
      %34 = arith.mulf %26, %33 : vector<4x32xf32>
      %c0_20 = arith.constant 0 : index
      %c0_21 = arith.constant 0 : index
      %35 = vector.load %arg8[%c0_20, %c0_21] : memref<8x32xf32, #tpu.memory_space<vmem>>, vector<8x32xf32>
      %cst_22 = arith.constant 5.000000e-01 : f32
      %36 = vector.broadcast %cst_22 : f32 to vector<8x32xf32>
      %37 = arith.mulf %35, %36 : vector<8x32xf32>
      %cst_23 = arith.constant dense<0.000000e+00> : vector<8x4xf32>
      %38 = tpu.matmul %37, %34, %cst_23 {dimension_numbers = #tpu.dot_dimension_numbers<[1], [1], [0], [0], [0, 0, 1, 0], [], []>} : vector<8x32xf32>, vector<4x32xf32>, vector<8x4xf32> -> vector<8x4xf32>
      %cst_24 = arith.constant dense<0.000000e+00> : vector<4x8xf32>
      %39 = tpu.matmul %34, %37, %cst_24 {dimension_numbers = #tpu.dot_dimension_numbers<[1], [1], [0], [0], [0, 0, 1, 0], [], []>} : vector<4x32xf32>, vector<8x32xf32>, vector<4x8xf32> -> vector<4x8xf32>
      %cst_25 = arith.constant 2.000000e+01 : f32
      %40 = vector.broadcast %cst_25 : f32 to vector<8x4xf32>
      %41 = arith.mulf %38, %40 : vector<8x4xf32>
      %42 = math.exp %41 : vector<8x4xf32>
      %cst_26 = arith.constant dense<0.000000e+00> : vector<8xf32>
      %43 = vector.multi_reduction <add>, %42, %cst_26 [1] : vector<8x4xf32> to vector<8xf32>
      %44 = vector.shape_cast %43 : vector<8xf32> to vector<8x1xf32>
      %45 = vector.broadcast %44 : vector<8x1xf32> to vector<8x4xf32>
      %46 = arith.divf %42, %45 : vector<8x4xf32>
      %c0_27 = arith.constant 0 : index
      %c0_28 = arith.constant 0 : index
      %47 = vector.load %arg6[%c0_27, %c0_28] : memref<8x4xf32, #tpu.memory_space<vmem>>, vector<8x4xf32>
      tpu.vector_store %arg6[%c0_27, %c0_28], %46 {strides = array<i32>} : memref<8x4xf32, #tpu.memory_space<vmem>>, vector<8x4xf32>,
      %cst_29 = arith.constant 2.000000e+01 : f32
      %48 = vector.broadcast %cst_29 : f32 to vector<4x8xf32>
      %49 = arith.mulf %39, %48 : vector<4x8xf32>
      %50 = math.exp %49 : vector<4x8xf32>
      %cst_30 = arith.constant dense<0.000000e+00> : vector<8xf32>
      %51 = vector.multi_reduction <add>, %50, %cst_30 [0] : vector<4x8xf32> to vector<8xf32>
      %52 = vector.shape_cast %51 : vector<8xf32> to vector<1x8xf32>
      %53 = vector.broadcast %52 : vector<1x8xf32> to vector<4x8xf32>
      %54 = arith.divf %50, %53 : vector<4x8xf32>
      %c0_31 = arith.constant 0 : index
      %c0_32 = arith.constant 0 : index
      %55 = vector.load %arg5[%c0_31, %c0_32] : memref<4x8xf32, #tpu.memory_space<vmem>>, vector<4x8xf32>
      %56 = math.log %55 : vector<4x8xf32>
      %cst_33 = arith.constant 1.000000e+00 : f32
      %57 = vector.broadcast %cst_33 : f32 to vector<4x8xf32>
      %58 = arith.subf %57, %55 : vector<4x8xf32>
      %59 = math.log %58 : vector<4x8xf32>
      %60 = arith.subf %56, %59 : vector<4x8xf32>
      %cst_34 = arith.constant 1.000000e-10 : f32
      %61 = vector.broadcast %cst_34 : f32 to vector<4x8xf32>
      %62 = arith.addf %54, %61 : vector<4x8xf32>
      %63 = math.log %62 : vector<4x8xf32>
      %cst_35 = arith.constant 1.000000e+00 : f32
      %64 = vector.broadcast %cst_35 : f32 to vector<4x8xf32>
      %65 = arith.subf %64, %54 : vector<4x8xf32>
      %cst_36 = arith.constant 1.000000e-10 : f32
      %66 = vector.broadcast %cst_36 : f32 to vector<4x8xf32>
      %67 = arith.addf %65, %66 : vector<4x8xf32>
      %68 = math.log %67 : vector<4x8xf32>
      %69 = arith.subf %63, %68 : vector<4x8xf32>
      %70 = arith.addf %69, %60 : vector<4x8xf32>
      %cst_37 = arith.constant 14.2857141 : f32
      %71 = vector.broadcast %cst_37 : f32 to vector<4x8xf32>
      %72 = arith.mulf %70, %71 : vector<4x8xf32>
      %73 = arith.negf %72 : vector<4x8xf32>
      %74 = math.exp %73 : vector<4x8xf32>
      %cst_38 = arith.constant 1.000000e+00 : f32
      %75 = vector.broadcast %cst_38 : f32 to vector<4x8xf32>
      %76 = arith.addf %75, %74 : vector<4x8xf32>
      %77 = arith.divf %75, %76 : vector<4x8xf32>
      %c0_39 = arith.constant 0 : index
      %c0_40 = arith.constant 0 : index
      %78 = vector.load %arg7[%c0_39, %c0_40] : memref<4x8xf32, #tpu.memory_space<vmem>>, vector<4x8xf32>
      tpu.vector_store %arg7[%c0_39, %c0_40], %77 {strides = array<i32>} : memref<4x8xf32, #tpu.memory_space<vmem>>, vector<4x8xf32>,
    } else {
    }
    return
  }
  func.func @transform_0(%arg0: i32) -> (i32, i32, i32) {
    %c0_i32 = arith.constant 0 : i32
    %c0_i32_0 = arith.constant 0 : i32
    %c0_i32_1 = arith.constant 0 : i32
    return %arg0, %c0_i32, %c0_i32_0 : i32, i32, i32
  }
  func.func @transform_1(%arg0: i32) -> (i32, i32) {
    %c0_i32 = arith.constant 0 : i32
    %c0_i32_0 = arith.constant 0 : i32
    %c0_i32_1 = arith.constant 0 : i32
    return %c0_i32, %c0_i32_0 : i32, i32
  }
  func.func @transform_2(%arg0: i32) -> (i32, i32) {
    %c0_i32 = arith.constant 0 : i32
    %c0_i32_0 = arith.constant 0 : i32
    %c0_i32_1 = arith.constant 0 : i32
    return %c0_i32, %c0_i32_0 : i32, i32
  }
  func.func @transform_3(%arg0: i32) -> (i32, i32) {
    %c0_i32 = arith.constant 0 : i32
    %c0_i32_0 = arith.constant 0 : i32
    %c0_i32_1 = arith.constant 0 : i32
    return %c0_i32, %c0_i32_0 : i32, i32
  }
  func.func @transform_4(%arg0: i32) -> (i32, i32) {
    %c0_i32 = arith.constant 0 : i32
    %c0_i32_0 = arith.constant 0 : i32
    %c0_i32_1 = arith.constant 0 : i32
    return %c0_i32, %c0_i32_0 : i32, i32
  }
  func.func @transform_5(%arg0: i32) -> (i32, i32) {
    %c0_i32 = arith.constant 0 : i32
    %c0_i32_0 = arith.constant 0 : i32
    %c0_i32_1 = arith.constant 0 : i32
    return %c0_i32, %c0_i32_0 : i32, i32
  }
  func.func @transform_6(%arg0: i32) -> (i32, i32) {
    %c0_i32 = arith.constant 0 : i32
    %c0_i32_0 = arith.constant 0 : i32
    %c0_i32_1 = arith.constant 0 : i32
    return %c0_i32, %c0_i32_0 : i32, i32
  }
}

</mosaic_0001>

<bundles_post_ra>
// kernel: tpu_custom_call.1
= control target key start
LH: loop header
LB: loop body
LE: loop exit
PB: predicated region body
PF: predicated region fallthrough
CT: control target
= control target key end

     0   :  { %12 = vsyncpa [#allocation4], 0  ;;  %s596_s0 = inlined_call_operand.hbm [shape: f32[2,8,16], index: 0, kind: input, shape index: {}]   ;;  %s597_s1 = inlined_call_operand.hbm [shape: f32[16,32], index: 1, kind: input, shape index: {}]   ;;  %s598_s2 = inlined_call_operand.vmem [shape: f32[1,32], index: 2, kind: input, shape index: {}]   ;;  %s599_s3 = inlined_call_operand.hbm [shape: f32[4,32], index: 3, kind: input, shape index: {}]   ;;  %s600_s4 = inlined_call_operand.hbm [shape: f32[4,8], index: 4, kind: input, shape index: {}]   ;;  %s601_s5 = inlined_call_operand.vmem [shape: f32[8,4], index: 5, kind: output, shape index: {0}]   ;;  %s602_s6 = inlined_call_operand.hbm [shape: f32[4,8], index: 6, kind: output, shape index: {1}]  }
   0x1   :  { %13 = vsyncpa [#allocation7], 0 }
   0x2   :  { %14 = vsyncpa [#allocation10], 0 }
   0x3   :  { %15 = vsyncpa [#allocation5], 0  ;;  %s33_s23 = sshll.u32 %s597_s1, 4  ;;  %s514_s24 = smov [#allocation6]   ;;  %s34_s23 = int_to_ptr.hbm [resolvable:$true] %s33_s23 }
   0x4   :  { %s35_s25 = sshll.u32 %s514_s24, 4  ;;  %s20_s28 = sshll.u32 %s596_s0, 4  ;;  %s36_s25 = int_to_ptr.vmem [resolvable:$true] %s35_s25  ;;  %s21_s28 = int_to_ptr.hbm [resolvable:$true] %s20_s28 }
   0x5   :  { %s515_s29 = smov 128   ;;  %s516_s30 = smov 8  }
   0x6   :  { %41 = dma.hbm_to_vmem [thread:$0]  %s34_s23, 256, %s36_s25, [#allocation7], %s515_s29, %s515_s29, %s516_s30  }
   0x7   :  { %s517_s7 = smov [#allocation3]   ;;  %s49_s11 = sshll.u32 %s599_s3, 4  ;;  %s50_s11 = int_to_ptr.hbm [resolvable:$true] %s49_s11 }
   0x8   :  { %s22_s8 = sshll.u32 %s517_s7, 4  ;;  %s60_s13 = sshll.u32 %s600_s4, 4  ;;  %s23_s8 = int_to_ptr.vmem [resolvable:$true] %s22_s8  ;;  %s61_s13 = int_to_ptr.hbm [resolvable:$true] %s60_s13 }
   0x9   :  { %28 = dma.hbm_to_vmem [thread:$0]  %s21_s28, 256, %s23_s8, [#allocation4], %s515_s29, %s515_s29, %s516_s30  }
   0xa   :  { %s518_s14 = smov [#allocation8]   ;;  %s519_s0 = smov [#allocation9]  }
   0xb   :  { %s51_s15 = sshll.u32 %s518_s14, 4  ;;  %s62_s16 = sshll.u32 %s519_s0, 4  ;;  %s52_s15 = int_to_ptr.vmem [resolvable:$true] %s51_s15  ;;  %s63_s16 = int_to_ptr.vmem [resolvable:$true] %s62_s16 }
   0xc   :  { %54 = dma.hbm_to_vmem [thread:$0]  %s50_s11, 64, %s52_s15, [#allocation7]  }
   0xd   :  { %65 = dma.hbm_to_vmem [thread:$0]  %s61_s13, 64, %s63_s16, [#allocation10]  }
   0xe   :  { %506 = dma.done.wait [#allocation4], 256  }
   0xf   :  { %507 = vsyncadd [#allocation4], 4294967040 }
  0x10   :  { %508 = dma.done.wait [#allocation7], 320  }
  0x11   :  { %509 = vsyncadd [#allocation7], 4294966976 }
  0x12   :  { %510 = dma.done.wait [#allocation10], 64  }
  0x13   :  { %511 = vsyncadd [#allocation10], 4294967232  ;;  %v85_v0 = vld [vmem:[#allocation6 + $0x8] sm:$0xff]  ;;  %v84_v1 = vld [vmem:[#allocation6] sm:$0xff]  ;;  %vm90_vm0 = vcmask 130048   ;;  %vm169_vm1 = vcmask 257024  }
  0x14   :  { %111 = vmatpush.msra.mxu0 %v85_v0  ;;  %349 = vmatpush.msra.mxu3 %v85_v0  ;;  %v82_v2 = vld [vmem:[#allocation3] sm:$0xff]  ;;  %v83_v3 = vld [vmem:[#allocation3 + $0x8] sm:$0xff]  ;;  %v359_v7 = vld [vmem:[%s598_s2] ss:$0 sm:$0xff]  ;;  %vm122_vm2 = vcmask 261120   ;;  %v520_v24 = vmov 0.0  }
  0x15   :  { %v167_v4 = vld [vmem:[#allocation8] sm:$0xf]  ;;  %160 = vst.msk [vmem:[#allocation2] sm:$0xff] %vm122_vm2, %v520_v24  ;;  %vm236_vm12 = vcmask 31744   ;;  %vm259_vm13 = vcmask 60416   ;;  %s521_s2 = smov [#allocation11]  }
  0x16   :  { %112 = vmatpush.msra.mxu0 %v84_v1  ;;  %350 = vmatpush.msra.mxu3 %v84_v1  ;;  %v168_v5 = vmul.f32 %v167_v4, %v167_v4  ;;  %s326_s17 = sshll.u32 %s521_s2, 4  ;;  %s328_s20 = sshll.u32 %s602_s6, 4  ;;  %s327_s17 = int_to_ptr.vmem [resolvable:$true] %s326_s17  ;;  %s329_s20 = int_to_ptr.hbm [resolvable:$true] %s328_s20 }
  0x17   :  { %342 = vmatmul.msk.f32.vlgmr.msra.gmra.mxu0 %vm90_vm0, %v82_v2  ;;  %343 = vmatmul.msk.f32.vlgmr.msra.gmra.mxu3 %vm90_vm0, %v83_v3 }
  0x18   :  { %v170_v6 = vsel %vm169_vm1, %v168_v5, 0.0 }
  0x19   :  { %171 = vadd.xlane.f32.xlu1 %v170_v6 }
  0x1c   :  { %v161_v48 = vld [vmem:[#allocation2] sm:$0xff] }
  0x8c   :  { %v172_v16 = vpop.xlane.xlu1 %171 }
  0x8d   :  { %v173_v17 = vmax.f32 %v172_v16, 1e-24 }
  0x8f   :  { %360 = vrsqrt.f32 %v173_v17  ;;  %vm180_vm3 = vweird.f32 %v173_v17 }
  0x94   :  { %v114_v8 = vpop.f32.mrf.mxu0 }
  0x95   :  { %v115_v9 = vadd.f32 %v359_v7, %v114_v8  ;;  %v361_v18 = vpop.eup %360 }
  0x96   :  { %v175_v19 = vmul.f32 %v361_v18, %v173_v17  ;;  %vm181_vm4 = vweird.f32 %v361_v18 }
  0x97   :  { %v120_v10 = vmul.f32 %v115_v9, %v115_v9  ;;  %vm182_vm5 = vmor %vm180_vm3, %vm181_vm4 }
  0x98   :  { %v176_v20 = vmul.f32 %v361_v18, %v175_v19 }
  0x99   :  { %v123_v11 = vsel %vm122_vm2, %v120_v10, 0.0  ;;  %v282_v10 = vld [vmem:[#allocation9] sm:$0xf] }
  0x9a   :  { %124 = vadd.xlane.f32.xlu0 %v123_v11  ;;  %v117_v12 = vpop.f32.mrf.mxu3  ;;  %v177_v21 = vmul.f32 0.5, %v176_v20 }
  0x9b   :  { %v118_v13 = vadd.f32 %v359_v7, %v117_v12 }
  0x9c   :  { %v178_v22 = vsub.f32 1.5, %v177_v21 }
  0x9d   :  { %v121_v14 = vmul.f32 %v118_v13, %v118_v13 }
  0x9e   :  { %v179_v23 = vmul.f32 %v361_v18, %v178_v22 }
  0x9f   :  { %v126_v15 = vsel %vm122_vm2, %v121_v14, 0.0  ;;  %v285_v14 = vsub.f32 1.0, %v282_v10 }
  0xa0   :  { %v183_v25 = vsel %vm182_vm5, %v361_v18, %v179_v23 }
  0xa1   :  { %v184_v26 = vmul.f32 %v183_v25, %v167_v4 }
  0xa2   :  { %127 = vadd.xlane.f32.xlu0 %v126_v15 }
  0xa3   :  { %344 = vmatpush.xpose.msk.msra.mxu1 %vm122_vm2, %v184_v26 }
 0x10d   :  { %v125_v27 = vpop.xlane.xlu0 %124 }
 0x10e   :  { %v129_v28 = vmax.f32 %v125_v27, 1e-24 }
 0x110   :  { %362 = vrsqrt.f32 %v129_v28  ;;  %vm137_vm7 = vweird.f32 %v129_v28 }
 0x115   :  { %v128_v29 = vpop.xlane.xlu0 %127 }
 0x116   :  { %v363_v30 = vpop.eup %362  ;;  %v130_v31 = vmax.f32 %v128_v29, 1e-24 }
 0x117   :  { %v132_v32 = vmul.f32 %v363_v30, %v129_v28  ;;  %vm138_vm6 = vweird.f32 %v363_v30 }
 0x118   :  { %364 = vrsqrt.f32 %v130_v31  ;;  %vm139_vm8 = vmor %vm137_vm7, %vm138_vm6  ;;  %vm147_vm10 = vweird.f32 %v130_v31 }
 0x119   :  { %v133_v33 = vmul.f32 %v363_v30, %v132_v32 }
 0x11b   :  { %v134_v34 = vmul.f32 0.5, %v133_v33 }
 0x11d   :  { %v135_v35 = vsub.f32 1.5, %v134_v34 }
 0x11e   :  { %v365_v36 = vpop.eup %364 }
 0x11f   :  { %v142_v37 = vmul.f32 %v365_v36, %v130_v31  ;;  %v136_v38 = vmul.f32 %v363_v30, %v135_v35  ;;  %vm148_vm9 = vweird.f32 %v365_v36 }
 0x120   :  { %vm149_vm11 = vmor %vm147_vm10, %vm148_vm9 }
 0x121   :  { %v143_v39 = vmul.f32 %v365_v36, %v142_v37  ;;  %v140_v41 = vsel %vm139_vm8, %v363_v30, %v136_v38 }
 0x122   :  { %v151_v44 = vmul.f32 %v140_v41, %v115_v9 }
 0x123   :  { %v144_v40 = vmul.f32 0.5, %v143_v39 }
 0x124   :  { %v153_v47 = vsel %vm122_vm2, %v151_v44, 0.0 }
 0x125   :  { %v145_v42 = vsub.f32 1.5, %v144_v40 }
 0x127   :  { %v146_v43 = vmul.f32 %v365_v36, %v145_v42 }
 0x129   :  { %v150_v45 = vsel %vm149_vm11, %v365_v36, %v146_v43 }
 0x12a   :  { %v152_v46 = vmul.f32 %v150_v45, %v118_v13 }
 0x12c   :  { %v154_v49 = vsel %vm122_vm2, %v152_v46, 0.0 }
 0x12d   :  { %v155_v50 = vadd.f32 %v154_v49, %v153_v47 }
 0x12f   :  { %v162_v51 = vadd.f32 %v161_v48, %v155_v50 }
 0x131   :  { %163 = vst.msk [vmem:[#allocation2] sm:$0xff] %vm122_vm2, %v162_v51 }
 0x138   :  { %v185_v52 = vld [vmem:[#allocation2] sm:$0xff] }
 0x139   :  { %v186_v53 = vmul.f32 0.5, %v185_v52 }
 0x13b   :  { %345 = vmatmul.msk.f32.vlgmr.msra.gmra.mxu1 %vm122_vm2, %v186_v53  ;;  %346 = vmatpush.xpose.msk.msra.mxu2 %vm122_vm2, %v186_v53 }
 0x13e   :  { %347 = vmatmul.msk.f32.vlgmr.msra.gmra.mxu2 %vm122_vm2, %v184_v26 }
 0x1b8   :  { %v210_v54 = vpop.f32.mrf.mxu1 }
 0x1b9   :  { %v233_v55 = vmul.f32 20.0, %v210_v54 }
 0x1bb   :  { %v234_v56 = vmul.f32 1.442695, %v233_v55 }
 0x1bd   :  { %366 = vpow2.f32 %v234_v56 }
 0x1c1   :  { %v230_v57 = vpop.f32.mrf.mxu2 }
 0x1c2   :  { %v256_v58 = vmul.f32 20.0, %v230_v57 }
 0x1c3   :  { %v582_v59 = vpop.eup %366 }
 0x1c4   :  { %v257_v60 = vmul.f32 1.442695, %v256_v58  ;;  %v237_v61 = vsel %vm236_vm12, %v582_v59, 0.0 }
 0x1c5   :  { %238 = vadd.xlane.f32.xlu1 %v237_v61 }
 0x1c6   :  { %368 = vpow2.f32 %v257_v60 }
 0x1cc   :  { %v369_v62 = vpop.eup %368 }
 0x1cd   :  { %v260_v63 = vsel %vm259_vm13, %v369_v62, 0.0 }
 0x1ce   :  { %v261_v0 = vrot.slane %v260_v63, 4 }
 0x1d0   :  { %v262_v1 = vadd.f32 %v261_v0, %v260_v63 }
 0x1d2   :  { %v263_v2 = vrot.slane %v262_v1, 2 }
 0x1d4   :  { %v264_v3 = vadd.f32 %v263_v2, %v262_v1 }
 0x1d6   :  { %v265_v4 = vrot.slane %v264_v3, 1 }
 0x1d8   :  { %v266_v5 = vadd.f32 %v265_v4, %v264_v3 }
 0x1da   :  { %370 = vrcp.f32 %v266_v5  ;;  %v278_v9 = vand.u32 2147483648, %v266_v5  ;;  %v276_v12 = vand.u32 2147483647, %v266_v5  ;;  %vm272_vm15 = vweird.f32 %v266_v5 }
 0x1db   :  { %372 = vlog2.f32 %v282_v10 }
 0x1dc   :  { %v279_v15 = vor.u32 1.1754944e-38, %v278_v9  ;;  %vm277_vm1 = vcmp.eq.f32.partialorder %v276_v12, 8.507059e+37  ;;  %374 = vlog2.f32 %v285_v14 }
 0x1e0   :  { %v371_v6 = vpop.eup %370 }
 0x1e1   :  { %v268_v7 = vmul.f32 %v371_v6, %v266_v5  ;;  %vm273_vm14 = vweird.f32 %v371_v6  ;;  %v373_v22 = vpop.eup %372 }
 0x1e2   :  { %vm274_vm0 = vmor %vm272_vm15, %vm273_vm14  ;;  %v375_v23 = vpop.eup %374  ;;  %v284_v24 = vmul.f32 0.6931472, %v373_v22 }
 0x1e3   :  { %v269_v8 = vsub.f32 1.0, %v268_v7  ;;  %v287_v25 = vmul.f32 0.6931472, %v375_v23 }
 0x1e5   :  { %v270_v11 = vmul.f32 %v371_v6, %v269_v8  ;;  %v288_v28 = vsub.f32 %v284_v24, %v287_v25 }
 0x1e7   :  { %v271_v13 = vadd.f32 %v371_v6, %v270_v11 }
 0x1e9   :  { %v275_v16 = vsel %vm274_vm0, %v371_v6, %v271_v13 }
 0x1ea   :  { %v280_v17 = vsel %vm277_vm1, %v279_v15, %v275_v16 }
 0x1eb   :  { %v281_v18 = vmul.f32 %v369_v62, %v280_v17 }
 0x1ed   :  { %v289_v19 = vadd.f32 1e-10, %v281_v18  ;;  %v292_v20 = vsub.f32 1.0, %v281_v18 }
 0x1ef   :  { %376 = vlog2.f32 %v289_v19  ;;  %v293_v21 = vadd.f32 1e-10, %v292_v20 }
 0x1f1   :  { %378 = vlog2.f32 %v293_v21 }
 0x1f5   :  { %v377_v26 = vpop.eup %376 }
 0x1f6   :  { %v291_v29 = vmul.f32 0.6931472, %v377_v26 }
 0x1f7   :  { %v379_v27 = vpop.eup %378 }
 0x1f8   :  { %v295_v30 = vmul.f32 0.6931472, %v379_v27 }
 0x1fa   :  { %v296_v31 = vsub.f32 %v291_v29, %v295_v30 }
 0x1fc   :  { %v297_v32 = vadd.f32 %v296_v31, %v288_v28 }
 0x1fe   :  { %v348_v33 = vmul.f32 -14.285714, %v297_v32 }
 0x200   :  { %v300_v34 = vmul.f32 1.442695, %v348_v33 }
 0x202   :  { %380 = vpow2.f32 %v300_v34 }
 0x208   :  { %v381_v35 = vpop.eup %380 }
 0x209   :  { %v302_v36 = vadd.f32 1.0, %v381_v35 }
 0x20b   :  { %382 = vrcp.f32 %v302_v36  ;;  %v314_v40 = vand.u32 2147483648, %v302_v36  ;;  %v312_v42 = vand.u32 2147483647, %v302_v36  ;;  %vm308_vm3 = vweird.f32 %v302_v36 }
 0x20d   :  { %v315_v44 = vor.u32 1.1754944e-38, %v314_v40  ;;  %vm313_vm5 = vcmp.eq.f32.partialorder %v312_v42, 8.507059e+37 }
 0x211   :  { %v383_v37 = vpop.eup %382 }
 0x212   :  { %v304_v38 = vmul.f32 %v383_v37, %v302_v36  ;;  %vm309_vm2 = vweird.f32 %v383_v37 }
 0x213   :  { %vm310_vm4 = vmor %vm308_vm3, %vm309_vm2 }
 0x214   :  { %v305_v39 = vsub.f32 1.0, %v304_v38 }
 0x216   :  { %v306_v41 = vmul.f32 %v383_v37, %v305_v39 }
 0x218   :  { %v307_v43 = vadd.f32 %v383_v37, %v306_v41 }
 0x21a   :  { %v311_v45 = vsel %vm310_vm4, %v383_v37, %v307_v43 }
 0x21b   :  { %v316_v46 = vsel %vm313_vm5, %v315_v44, %v311_v45 }
 0x21c   :  { %318 = vst.msk [vmem:[#allocation11] sm:$0xf] %vm259_vm13, %v316_v46 }
 0x21d   :  { %331 = dma.vmem_to_hbm [thread:$0]  %s327_s17, 64, %s329_s20, [#allocation5]  }
 0x238   :  { %v239_v47 = vpop.xlane.xlu1 %238 }
 0x239   :  { %384 = vrcp.f32 %v239_v47  ;;  %v251_v51 = vand.u32 2147483648, %v239_v47  ;;  %v249_v53 = vand.u32 2147483647, %v239_v47  ;;  %vm245_vm7 = vweird.f32 %v239_v47 }
 0x23b   :  { %v252_v55 = vor.u32 1.1754944e-38, %v251_v51  ;;  %vm250_vm9 = vcmp.eq.f32.partialorder %v249_v53, 8.507059e+37 }
 0x23f   :  { %v385_v48 = vpop.eup %384 }
 0x240   :  { %v241_v49 = vmul.f32 %v385_v48, %v239_v47  ;;  %vm246_vm6 = vweird.f32 %v385_v48 }
 0x241   :  { %vm247_vm8 = vmor %vm245_vm7, %vm246_vm6 }
 0x242   :  { %v242_v50 = vsub.f32 1.0, %v241_v49 }
 0x244   :  { %v243_v52 = vmul.f32 %v385_v48, %v242_v50 }
 0x246   :  { %v244_v54 = vadd.f32 %v385_v48, %v243_v52 }
 0x248   :  { %v248_v56 = vsel %vm247_vm8, %v385_v48, %v244_v54 }
 0x249   :  { %v253_v57 = vsel %vm250_vm9, %v252_v55, %v248_v56 }
 0x24a   :  { %v254_v58 = vmul.f32 %v582_v59, %v253_v57 }
 0x24c   :  { %255 = vst.msk [vmem:[%s601_s5] sm:$0xff] %vm236_vm12, %v254_v58 }
 0x24d   :  { %512 = dma.done.wait [#allocation5], 64  }
 0x24e   :  { %513 = vsyncadd [#allocation5], 4294967232 }
 0x24f   :  { %338 = vsyncpa [#allocation4], 1 }
 0x250   :  { %339 = vsyncpa [#allocation7], 1 }
 0x251   :  { %340 = vsyncpa [#allocation10], 1 }
 0x252   :  { %341 = vsyncpa [#allocation5], 1 }

</bundles_post_ra>
